<compile_context>
chip_gen: v7x
topology: tpu7x:2x2x1
jax: 0.10.0
libtpu: 0.0.40
codegen_flags: <defaults>
</compile_context>

<pallas_src>
import functools

import jax
import jax.numpy as jnp
from jax.experimental import pallas as pl
from jax.experimental.pallas import tpu as pltpu


# ---------------------------------------------------------------------------
# Sizing helpers
# ---------------------------------------------------------------------------

def _vmem_limit_bytes():
    """Generation-aware scoped-VMEM limit (v5e/v6e ~96 MiB, v7x ~48 MiB)."""
    phys = 64 << 20  # conservative fallback (v7x per-TC size)
    try:
        info = pltpu.get_tpu_info()
        phys = int(getattr(info, "vmem_capacity_bytes", phys))
    except Exception:
        pass
    return min((phys * 3) // 4, 96 << 20)


def _pick_hw_tile(hw_pad, bytes_per_col, budget_bytes):
    """Largest multiple of 128 dividing hw_pad whose streaming cost fits."""
    cap = max(128, budget_bytes // max(bytes_per_col, 1))
    t = min((cap // 128) * 128, hw_pad)
    while t > 128 and hw_pad % t != 0:
        t -= 128
    return max(t, 128)


# ---------------------------------------------------------------------------
# Kernels
# ---------------------------------------------------------------------------

def _feat_tile(fsp_ref, fcp_ref, wt_ref, bias_ref, cat_ref, csp):
    """relu(Wt @ [fsp; fcp] + bias) for one (Cin, T) tile -> (Cout, T) f32."""
    # Stage both halves into adjacent sublane ranges -> one K=Cin MXU dot.
    cat_ref[0:csp, :] = fsp_ref[0]
    cat_ref[csp:, :] = fcp_ref[0]
    x = jnp.dot(wt_ref[...], cat_ref[...], preferred_element_type=jnp.float32)
    return jnp.maximum(x + bias_ref[...], 0.0)


def _fused_kernel(fsp_ref, fcp_ref, wt_ref, bias_ref, w1_ref, w2t_ref,
                  out_ref, cat_ref, feat_ref, sum_ref, atten_ref,
                  *, csp, inv_hw, hw_tile, n_pad):
    """Single-call fusion: feat stays VMEM-resident for the whole batch."""
    p = pl.program_id(1)          # 0: compute feat + sums, 1: apply attention
    t = pl.program_id(2)          # HW tile index
    off = pl.multiple_of(t * hw_tile, hw_tile)

    # ---- phase 0: feat tile -> resident VMEM feat, accumulate channel sums.
    @pl.when(p == 0)
    def _():
        @pl.when(t == 0)
        def _():
            sum_ref[...] = jnp.zeros_like(sum_ref)
        feat = _feat_tile(fsp_ref, fcp_ref, wt_ref, bias_ref, cat_ref, csp)
        feat_ref[:, pl.ds(off, hw_tile)] = feat
        sum_ref[...] += jnp.sum(feat, axis=1, keepdims=True)       # (Cout, 1)

    # ---- phase transition: SE attention, once per batch.
    @pl.when(jnp.logical_and(p == 1, t == 0))
    def _():
        # Zero-padded spatial columns contribute exactly relu(bias) each.
        s = sum_ref[...] - n_pad * jnp.maximum(bias_ref[...], 0.0)
        mean = s * inv_hw                                           # (Cout, 1)
        h = jnp.maximum(jnp.sum(w1_ref[...] * mean, axis=0, keepdims=True), 0.0)
        atten_ref[...] = jax.nn.sigmoid(
            jnp.sum(w2t_ref[...] * h, axis=1, keepdims=True))       # (Cout, 1)

    # ---- phase 1: out = feat * (1 + atten), streamed out of VMEM.
    @pl.when(p == 1)
    def _():
        out_ref[0] = feat_ref[:, pl.ds(off, hw_tile)] * (1.0 + atten_ref[...])


def _feat_sum_kernel(fsp_ref, fcp_ref, wt_ref, bias_ref,
                     feat_out_ref, sum_ref, cat_ref, *, csp):
    """Two-pass fallback, pass 1: feat tiles to HBM + per-batch channel sums."""
    @pl.when(pl.program_id(1) == 0)
    def _():
        sum_ref[0] = jnp.zeros_like(sum_ref[0])
    feat = _feat_tile(fsp_ref, fcp_ref, wt_ref, bias_ref, cat_ref, csp)
    feat_out_ref[0] = feat.astype(feat_out_ref.dtype)
    sum_ref[0] += jnp.sum(feat, axis=1, keepdims=True)


def _apply_kernel(atten_ref, feat_ref, out_ref):
    """Two-pass fallback, pass 2: out = feat * (1 + atten)."""
    out_ref[0] = feat_ref[0].astype(jnp.float32) * (1.0 + atten_ref[0])


# ---------------------------------------------------------------------------
# Wrapper
# ---------------------------------------------------------------------------

def context_spatial_fusion(fsp, fcp, params, *, hw_tile=None,
                           use_bf16=False, force_two_pass=False):
    """fsp, fcp: NCHW float32.  Returns NCHW float32."""
    N, Csp, H, W = fsp.shape
    Ccp = fcp.shape[1]
    Cin = Csp + Ccp
    HW = H * W
    w = params["w"]                                # (Cin, Cout)
    Cout = w.shape[1]
    w1 = params["w1"].astype(jnp.float32)          # (Cout, Cmid)
    w2t = params["w2"].T.astype(jnp.float32)       # (Cout, Cmid)
    Cmid = w1.shape[1]

    compute_dtype = jnp.bfloat16 if use_bf16 else jnp.float32
    esz = jnp.dtype(compute_dtype).itemsize

    # NCHW -> (N, C, HW): pure reshape; pad lanes to a multiple of 128.
    hw_pad = pl.cdiv(HW, 128) * 128
    n_pad = hw_pad - HW
    fsp_f = fsp.reshape(N, Csp, HW).astype(compute_dtype)
    fcp_f = fcp.reshape(N, Ccp, HW).astype(compute_dtype)
    if n_pad:
        pad = ((0, 0), (0, 0), (0, n_pad))
        fsp_f = jnp.pad(fsp_f, pad)
        fcp_f = jnp.pad(fcp_f, pad)

    # BN scale folded into the transposed 1x1 conv weight (bias stays f32).
    wt = (w * params["bn_scale"][None, :]).T.astype(compute_dtype)   # (Cout, Cin)
    bias_col = params["bn_bias"].reshape(Cout, 1).astype(jnp.float32)

    vmem_limit = _vmem_limit_bytes()
    budget = (vmem_limit * 3) // 5               # headroom for weights/sems

    feat_bytes = Cout * hw_pad * 4               # f32 resident feat (fused)
    per_col_fused = 3 * Cin * esz + 2 * Cout * 4  # in x2 + cat stage + out x2
    fused_ok = (not force_two_pass) and (
        feat_bytes + 128 * per_col_fused <= budget)

    if fused_ok:
        if hw_tile is None:
            hw_tile = _pick_hw_tile(hw_pad, per_col_fused, budget - feat_bytes)
        assert hw_pad % hw_tile == 0 and hw_tile % 128 == 0, (hw_pad, hw_tile)
        n_t = hw_pad // hw_tile

        kernel = functools.partial(
            _fused_kernel, csp=Csp, inv_hw=1.0 / HW, hw_tile=hw_tile,
            n_pad=n_pad)
        out = pl.pallas_call(
            kernel,
            out_shape=jax.ShapeDtypeStruct((N, Cout, hw_pad), jnp.float32),
            grid_spec=pltpu.PrefetchScalarGridSpec(
                num_scalar_prefetch=0,
                grid=(N, 2, n_t),
                in_specs=[
                    # Pinned to the last tile during phase 1 -> no re-fetch.
                    pl.BlockSpec((1, Csp, hw_tile),
                                 lambda b, p, t: (b, 0, t * (1 - p) + (n_t - 1) * p)),
                    pl.BlockSpec((1, Ccp, hw_tile),
                                 lambda b, p, t: (b, 0, t * (1 - p) + (n_t - 1) * p)),
                    pl.BlockSpec((Cout, Cin), lambda b, p, t: (0, 0)),
                    pl.BlockSpec((Cout, 1), lambda b, p, t: (0, 0)),
                    pl.BlockSpec((Cout, Cmid), lambda b, p, t: (0, 0)),
                    pl.BlockSpec((Cout, Cmid), lambda b, p, t: (0, 0)),
                ],
                # Resident at tile 0 during phase 0; only written in phase 1.
                out_specs=pl.BlockSpec((1, Cout, hw_tile),
                                       lambda b, p, t: (b, 0, t * p)),
                scratch_shapes=[
                    pltpu.VMEM((Cin, hw_tile), compute_dtype),   # concat stage
                    pltpu.VMEM((Cout, hw_pad), jnp.float32),     # resident feat
                    pltpu.VMEM((Cout, 1), jnp.float32),          # channel sums
                    pltpu.VMEM((Cout, 1), jnp.float32),          # attention
                ]),
            compiler_params=pltpu.CompilerParams(
                dimension_semantics=("parallel", "arbitrary", "arbitrary"),
                vmem_limit_bytes=vmem_limit),
        )(fsp_f, fcp_f, wt, bias_col, w1, w2t)
    else:
        # ---- two-pass fallback (feat too large to keep VMEM-resident) ----
        if hw_tile is None:
            per_col = max(3 * Cin * esz + 2 * Cout * 4, 4 * Cout * 4)
            hw_tile = _pick_hw_tile(hw_pad, per_col, budget)
        assert hw_pad % hw_tile == 0 and hw_tile % 128 == 0, (hw_pad, hw_tile)
        n_t = hw_pad // hw_tile
        feat_dtype = compute_dtype   # bf16 halves the feat HBM round-trip

        feat, sums = pl.pallas_call(
            functools.partial(_feat_sum_kernel, csp=Csp),
            out_shape=(jax.ShapeDtypeStruct((N, Cout, hw_pad), feat_dtype),
                       jax.ShapeDtypeStruct((N, Cout, 1), jnp.float32)),
            grid_spec=pltpu.PrefetchScalarGridSpec(
                num_scalar_prefetch=0,
                grid=(N, n_t),
                in_specs=[
                    pl.BlockSpec((1, Csp, hw_tile), lambda b, t: (b, 0, t)),
                    pl.BlockSpec((1, Ccp, hw_tile), lambda b, t: (b, 0, t)),
                    pl.BlockSpec((Cout, Cin), lambda b, t: (0, 0)),
                    pl.BlockSpec((Cout, 1), lambda b, t: (0, 0)),
                ],
                out_specs=(
                    pl.BlockSpec((1, Cout, hw_tile), lambda b, t: (b, 0, t)),
                    pl.BlockSpec((1, Cout, 1), lambda b, t: (b, 0, 0)),
                ),
                scratch_shapes=[pltpu.VMEM((Cin, hw_tile), compute_dtype)]),
            compiler_params=pltpu.CompilerParams(
                dimension_semantics=("parallel", "arbitrary"),
                vmem_limit_bytes=vmem_limit),
        )(fsp_f, fcp_f, wt, bias_col)

        # SE attention once per batch, in plain JAX (tiny (N, Cout) tensors).
        s = sums[:, :, 0] - n_pad * jax.nn.relu(params["bn_bias"])[None, :]
        mean = s / HW
        h = jax.nn.relu(mean @ params["w1"])
        atten = jax.nn.sigmoid(h @ params["w2"])[:, :, None]       # (N, Cout, 1)

        out = pl.pallas_call(
            _apply_kernel,
            out_shape=jax.ShapeDtypeStruct((N, Cout, hw_pad), jnp.float32),
            grid_spec=pltpu.PrefetchScalarGridSpec(
                num_scalar_prefetch=0,
                grid=(N, n_t),
                in_specs=[
                    pl.BlockSpec((1, Cout, 1), lambda b, t: (b, 0, 0)),
                    pl.BlockSpec((1, Cout, hw_tile), lambda b, t: (b, 0, t)),
                ],
                out_specs=pl.BlockSpec((1, Cout, hw_tile), lambda b, t: (b, 0, t)),
            ),
            compiler_params=pltpu.CompilerParams(
                dimension_semantics=("parallel", "parallel"),
                vmem_limit_bytes=vmem_limit),
        )(atten.astype(jnp.float32), feat)

    if n_pad:
        out = out[:, :, :HW]
    return out.reshape(N, Cout, H, W)


# ---------------------------------------------------------------------------
# Parameters & reference
# ---------------------------------------------------------------------------

def make_params(key, in_chan, out_chan):
    """Deterministic synthetic parameters (module shapes from __init__)."""
    k0, k1, k2, k3, k4, k5, k6 = jax.random.split(key, 7)
    # CBA conv: (in_chan, out_chan), 1x1, no bias (BN follows)
    w = 0.2 * jax.random.normal(k0, (in_chan, out_chan), jnp.float32)
    # BatchNorm (inference) folded into per-channel scale/bias
    gamma = 1.0 + 0.1 * jax.random.normal(k1, (out_chan,), jnp.float32)
    beta = 0.1 * jax.random.normal(k2, (out_chan,), jnp.float32)
    running_mean = 0.1 * jax.random.normal(k3, (out_chan,), jnp.float32)
    running_var = 1.0 + 0.1 * jax.nn.softplus(
        jax.random.normal(k4, (out_chan,), jnp.float32))
    eps = 1e-5
    bn_scale = gamma / jnp.sqrt(running_var + eps)
    bn_bias = beta - running_mean * bn_scale
    # attention 1x1 convs (bias=False)
    w1 = 0.2 * jax.random.normal(k5, (out_chan, out_chan // 4), jnp.float32)
    w2 = 0.2 * jax.random.normal(k6, (out_chan // 4, out_chan), jnp.float32)
    return {"w": w, "bn_scale": bn_scale, "bn_bias": bn_bias,
            "w1": w1, "w2": w2}


def reference(fsp, fcp, params):
    """Pure-JAX reference mirroring the PyTorch forward (NCHW)."""
    fcat = jnp.concatenate([fsp, fcp], axis=1)                  # (N, Cin, H, W)
    x = jnp.einsum("nchw,cd->ndhw", fcat, params["w"])
    feat = jax.nn.relu(x * params["bn_scale"][None, :, None, None]
                       + params["bn_bias"][None, :, None, None])
    atten = jnp.mean(feat, axis=(2, 3))                          # (N, Cout)
    atten = jax.nn.relu(atten @ params["w1"])
    atten = jax.nn.sigmoid(atten @ params["w2"])                 # (N, Cout)
    atten = atten[:, :, None, None]
    return feat * atten + feat


if __name__ == "__main__":
    key = jax.random.PRNGKey(0)
    k_fsp, k_fcp, k_par, k_fsp2, k_fcp2 = jax.random.split(key, 5)

    N, Cfsp, Cfcp, H, W = 2, 4, 4, 16, 16
    in_chan = Cfsp + Cfcp      # 8
    out_chan = 8               # out_chan // 4 == 2

    fsp = jax.random.normal(k_fsp, (N, Cfsp, H, W), jnp.float32)
    fcp = jax.random.normal(k_fcp, (N, Cfcp, H, W), jnp.float32)
    params = make_params(k_par, in_chan, out_chan)
    ref = reference(fsp, fcp, params)

    def check(out, want, tol, tag):
        assert out.shape == want.shape, (tag, out.shape, want.shape)
        err = float(jnp.max(jnp.abs(out - want)))
        assert jnp.allclose(out, want, rtol=tol, atol=tol), (tag, err)

    # Fused single-call path (default auto-tiling).
    out = jax.block_until_ready(context_spatial_fusion(fsp, fcp, params))
    check(out, ref, 1e-5, "fused")

    # Fused path, forced multi-tile HW sweep (exercises resident feat/sums).
    out = jax.block_until_ready(
        context_spatial_fusion(fsp, fcp, params, hw_tile=128))
    check(out, ref, 1e-5, "fused_tiled")

    # Two-pass fallback (used when per-batch feat exceeds the VMEM budget).
    out = jax.block_until_ready(
        context_spatial_fusion(fsp, fcp, params, hw_tile=128,
                               force_two_pass=True))
    check(out, ref, 1e-5, "two_pass")

    # Ragged spatial size (HW=60 -> padded to 128 lanes) on both paths.
    fsp_r = jax.random.normal(k_fsp2, (N, Cfsp, 6, 10), jnp.float32)
    fcp_r = jax.random.normal(k_fcp2, (N, Cfcp, 6, 10), jnp.float32)
    ref_r = reference(fsp_r, fcp_r, params)
    out = jax.block_until_ready(context_spatial_fusion(fsp_r, fcp_r, params))
    check(out, ref_r, 1e-5, "fused_ragged")
    out = jax.block_until_ready(
        context_spatial_fusion(fsp_r, fcp_r, params, force_two_pass=True))
    check(out, ref_r, 1e-5, "two_pass_ragged")

    # Optional bf16 compute path (gated; looser tolerance).
    out = jax.block_until_ready(
        context_spatial_fusion(fsp, fcp, params, use_bf16=True))
    check(out, ref, 5e-2, "fused_bf16")

    print("KERNEL_OK")
</pallas_src>

<mosaic_0001>
module attributes {stable_mosaic.version = 11 : i64} {
  func.func @_fused_kernel(%arg0: i32, %arg1: i32, %arg2: i32, %arg3: memref<1x4x256xf32, #tpu.memory_space<vmem>>, %arg4: memref<1x4x256xf32, #tpu.memory_space<vmem>>, %arg5: memref<8x8xf32, #tpu.memory_space<vmem>>, %arg6: memref<8x1xf32, #tpu.memory_space<vmem>>, %arg7: memref<8x2xf32, #tpu.memory_space<vmem>>, %arg8: memref<8x2xf32, #tpu.memory_space<vmem>>, %arg9: memref<1x8x256xf32, #tpu.memory_space<vmem>>, %arg10: memref<8x256xf32, #tpu.memory_space<vmem>>, %arg11: memref<8x256xf32, #tpu.memory_space<vmem>>, %arg12: memref<8x1xf32, #tpu.memory_space<vmem>>, %arg13: memref<8x1xf32, #tpu.memory_space<vmem>>) attributes {dimension_semantics = [#tpu.dimension_semantics<parallel>, #tpu.dimension_semantics<arbitrary>, #tpu.dimension_semantics<arbitrary>], iteration_bounds = array<i64: 2, 2, 1>, scalar_prefetch = 0 : i64, scratch_operands = 4 : i64, tpu.core_type = #tpu.core_type<tc>, window_params = [{transform_indices = @transform_0, window_bounds = array<i64: 1, 4, 256>}, {transform_indices = @transform_1, window_bounds = array<i64: 1, 4, 256>}, {pipeline_mode = #tpu.pipeline_mode<synchronous>, transform_indices = @transform_2, window_bounds = array<i64: 8, 8>}, {pipeline_mode = #tpu.pipeline_mode<synchronous>, transform_indices = @transform_3, window_bounds = array<i64: 8, 1>}, {pipeline_mode = #tpu.pipeline_mode<synchronous>, transform_indices = @transform_4, window_bounds = array<i64: 8, 2>}, {pipeline_mode = #tpu.pipeline_mode<synchronous>, transform_indices = @transform_5, window_bounds = array<i64: 8, 2>}, {transform_indices = @transform_6, window_bounds = array<i64: 1, 8, 256>}]} {
    %c256_i32 = arith.constant 256 : i32
    %0 = arith.muli %arg2, %c256_i32 : i32
    %1 = tpu.assume_multiple %0, 256 : i32
    %c0_i32 = arith.constant 0 : i32
    %2 = arith.cmpi eq, %arg1, %c0_i32 : i32
    %3 = arith.extui %2 : i1 to i32
    %c0_i32_0 = arith.constant 0 : i32
    %4 = arith.cmpi ne, %3, %c0_i32_0 : i32
    scf.if %4 {
      %c0_i32_5 = arith.constant 0 : i32
      %13 = arith.cmpi eq, %arg2, %c0_i32_5 : i32
      %14 = arith.extui %13 : i1 to i32
      %c0_i32_6 = arith.constant 0 : i32
      %15 = arith.cmpi ne, %14, %c0_i32_6 : i32
      scf.if %15 {
        %cst_28 = arith.constant 0.000000e+00 : f32
        %37 = vector.broadcast %cst_28 : f32 to vector<8x1xf32>
        %c0_29 = arith.constant 0 : index
        %c0_30 = arith.constant 0 : index
        %38 = vector.load %arg12[%c0_29, %c0_30] : memref<8x1xf32, #tpu.memory_space<vmem>>, vector<8x1xf32>
        tpu.vector_store %arg12[%c0_29, %c0_30], %37 {strides = array<i32>} : memref<8x1xf32, #tpu.memory_space<vmem>>, vector<8x1xf32>,
      } else {
      }
      %c0 = arith.constant 0 : index
      %c0_7 = arith.constant 0 : index
      %c0_8 = arith.constant 0 : index
      %16 = vector.load %arg3[%c0, %c0_7, %c0_8] : memref<1x4x256xf32, #tpu.memory_space<vmem>>, vector<1x4x256xf32>
      %17 = vector.shape_cast %16 : vector<1x4x256xf32> to vector<4x256xf32>
      %c0_9 = arith.constant 0 : index
      %c0_10 = arith.constant 0 : index
      %18 = vector.load %arg10[%c0_9, %c0_10] : memref<8x256xf32, #tpu.memory_space<vmem>>, vector<4x256xf32>
      tpu.vector_store %arg10[%c0_9, %c0_10], %17 {strides = array<i32>} : memref<8x256xf32, #tpu.memory_space<vmem>>, vector<4x256xf32>,
      %c0_11 = arith.constant 0 : index
      %c0_12 = arith.constant 0 : index
      %c0_13 = arith.constant 0 : index
      %19 = vector.load %arg4[%c0_11, %c0_12, %c0_13] : memref<1x4x256xf32, #tpu.memory_space<vmem>>, vector<1x4x256xf32>
      %20 = vector.shape_cast %19 : vector<1x4x256xf32> to vector<4x256xf32>
      %c4 = arith.constant 4 : index
      %c0_14 = arith.constant 0 : index
      %21 = vector.load %arg10[%c4, %c0_14] : memref<8x256xf32, #tpu.memory_space<vmem>>, vector<4x256xf32>
      tpu.vector_store %arg10[%c4, %c0_14], %20 {strides = array<i32>} : memref<8x256xf32, #tpu.memory_space<vmem>>, vector<4x256xf32>,
      %c0_15 = arith.constant 0 : index
      %c0_16 = arith.constant 0 : index
      %22 = vector.load %arg5[%c0_15, %c0_16] : memref<8x8xf32, #tpu.memory_space<vmem>>, vector<8x8xf32>
      %c0_17 = arith.constant 0 : index
      %c0_18 = arith.constant 0 : index
      %23 = vector.load %arg10[%c0_17, %c0_18] : memref<8x256xf32, #tpu.memory_space<vmem>>, vector<8x256xf32>
      %cst = arith.constant dense<0.000000e+00> : vector<8x256xf32>
      %24 = tpu.matmul %22, %23, %cst {dimension_numbers = #tpu.dot_dimension_numbers<[1], [0], [0], [1], [0, 0, 1, 1], [], []>} : vector<8x8xf32>, vector<8x256xf32>, vector<8x256xf32> -> vector<8x256xf32>
      %c0_19 = arith.constant 0 : index
      %c0_20 = arith.constant 0 : index
      %25 = vector.load %arg6[%c0_19, %c0_20] : memref<8x1xf32, #tpu.memory_space<vmem>>, vector<8x1xf32>
      %26 = vector.broadcast %25 : vector<8x1xf32> to vector<8x256xf32>
      %27 = arith.addf %24, %26 : vector<8x256xf32>
      %cst_21 = arith.constant 0.000000e+00 : f32
      %28 = vector.broadcast %cst_21 : f32 to vector<8x256xf32>
      %29 = arith.maximumf %27, %28 : vector<8x256xf32>
      %c0_22 = arith.constant 0 : index
      %30 = arith.index_cast %1 : i32 to index
      %31 = vector.load %arg11[%c0_22, %30] : memref<8x256xf32, #tpu.memory_space<vmem>>, vector<8x256xf32>
      tpu.vector_store %arg11[%c0_22, %30], %29 {strides = array<i32>} : memref<8x256xf32, #tpu.memory_space<vmem>>, vector<8x256xf32>,
      %c0_23 = arith.constant 0 : index
      %c0_24 = arith.constant 0 : index
      %32 = vector.load %arg12[%c0_23, %c0_24] : memref<8x1xf32, #tpu.memory_space<vmem>>, vector<8x1xf32>
      %cst_25 = arith.constant dense<0.000000e+00> : vector<8xf32>
      %33 = vector.multi_reduction <add>, %29, %cst_25 [1] : vector<8x256xf32> to vector<8xf32>
      %34 = vector.shape_cast %33 : vector<8xf32> to vector<8x1xf32>
      %35 = arith.addf %32, %34 : vector<8x1xf32>
      %c0_26 = arith.constant 0 : index
      %c0_27 = arith.constant 0 : index
      %36 = vector.load %arg12[%c0_26, %c0_27] : memref<8x1xf32, #tpu.memory_space<vmem>>, vector<8x1xf32>
      tpu.vector_store %arg12[%c0_26, %c0_27], %35 {strides = array<i32>} : memref<8x1xf32, #tpu.memory_space<vmem>>, vector<8x1xf32>,
    } else {
    }
    %c1_i32 = arith.constant 1 : i32
    %5 = arith.cmpi eq, %arg1, %c1_i32 : i32
    %c0_i32_1 = arith.constant 0 : i32
    %6 = arith.cmpi eq, %arg2, %c0_i32_1 : i32
    %7 = arith.andi %5, %6 : i1
    %8 = arith.extui %7 : i1 to i32
    %c0_i32_2 = arith.constant 0 : i32
    %9 = arith.cmpi ne, %8, %c0_i32_2 : i32
    scf.if %9 {
      %c0 = arith.constant 0 : index
      %c0_5 = arith.constant 0 : index
      %13 = vector.load %arg12[%c0, %c0_5] : memref<8x1xf32, #tpu.memory_space<vmem>>, vector<8x1xf32>
      %c0_6 = arith.constant 0 : index
      %c0_7 = arith.constant 0 : index
      %14 = vector.load %arg6[%c0_6, %c0_7] : memref<8x1xf32, #tpu.memory_space<vmem>>, vector<8x1xf32>
      %cst = arith.constant 0.000000e+00 : f32
      %15 = vector.broadcast %cst : f32 to vector<8x1xf32>
      %16 = arith.maximumf %14, %15 : vector<8x1xf32>
      %cst_8 = arith.constant 0.000000e+00 : f32
      %17 = vector.broadcast %cst_8 : f32 to vector<8x1xf32>
      %18 = arith.mulf %17, %16 : vector<8x1xf32>
      %19 = arith.subf %13, %18 : vector<8x1xf32>
      %cst_9 = arith.constant 3.906250e-03 : f32
      %20 = vector.broadcast %cst_9 : f32 to vector<8x1xf32>
      %21 = arith.mulf %19, %20 : vector<8x1xf32>
      %c0_10 = arith.constant 0 : index
      %c0_11 = arith.constant 0 : index
      %22 = vector.load %arg7[%c0_10, %c0_11] : memref<8x2xf32, #tpu.memory_space<vmem>>, vector<8x2xf32>
      %23 = vector.broadcast %21 : vector<8x1xf32> to vector<8x2xf32>
      %24 = arith.mulf %22, %23 : vector<8x2xf32>
      %cst_12 = arith.constant dense<0.000000e+00> : vector<2xf32>
      %25 = vector.multi_reduction <add>, %24, %cst_12 [0] : vector<8x2xf32> to vector<2xf32>
      %26 = vector.shape_cast %25 : vector<2xf32> to vector<1x2xf32>
      %cst_13 = arith.constant 0.000000e+00 : f32
      %27 = vector.broadcast %cst_13 : f32 to vector<1x2xf32>
      %28 = arith.maximumf %26, %27 : vector<1x2xf32>
      %c0_14 = arith.constant 0 : index
      %c0_15 = arith.constant 0 : index
      %29 = vector.load %arg8[%c0_14, %c0_15] : memref<8x2xf32, #tpu.memory_space<vmem>>, vector<8x2xf32>
      %30 = vector.broadcast %28 : vector<1x2xf32> to vector<8x2xf32>
      %31 = arith.mulf %29, %30 : vector<8x2xf32>
      %cst_16 = arith.constant dense<0.000000e+00> : vector<8xf32>
      %32 = vector.multi_reduction <add>, %31, %cst_16 [1] : vector<8x2xf32> to vector<8xf32>
      %33 = vector.shape_cast %32 : vector<8xf32> to vector<8x1xf32>
      %34 = arith.negf %33 : vector<8x1xf32>
      %35 = math.exp %34 : vector<8x1xf32>
      %cst_17 = arith.constant 1.000000e+00 : f32
      %36 = vector.broadcast %cst_17 : f32 to vector<8x1xf32>
      %37 = arith.addf %36, %35 : vector<8x1xf32>
      %38 = arith.divf %36, %37 : vector<8x1xf32>
      %c0_18 = arith.constant 0 : index
      %c0_19 = arith.constant 0 : index
      %39 = vector.load %arg13[%c0_18, %c0_19] : memref<8x1xf32, #tpu.memory_space<vmem>>, vector<8x1xf32>
      tpu.vector_store %arg13[%c0_18, %c0_19], %38 {strides = array<i32>} : memref<8x1xf32, #tpu.memory_space<vmem>>, vector<8x1xf32>,
    } else {
    }
    %c1_i32_3 = arith.constant 1 : i32
    %10 = arith.cmpi eq, %arg1, %c1_i32_3 : i32
    %11 = arith.extui %10 : i1 to i32
    %c0_i32_4 = arith.constant 0 : i32
    %12 = arith.cmpi ne, %11, %c0_i32_4 : i32
    scf.if %12 {
      %c0 = arith.constant 0 : index
      %13 = arith.index_cast %1 : i32 to index
      %14 = vector.load %arg11[%c0, %13] : memref<8x256xf32, #tpu.memory_space<vmem>>, vector<8x256xf32>
      %c0_5 = arith.constant 0 : index
      %c0_6 = arith.constant 0 : index
      %15 = vector.load %arg13[%c0_5, %c0_6] : memref<8x1xf32, #tpu.memory_space<vmem>>, vector<8x1xf32>
      %cst = arith.constant 1.000000e+00 : f32
      %16 = vector.broadcast %cst : f32 to vector<8x1xf32>
      %17 = arith.addf %16, %15 : vector<8x1xf32>
      %18 = vector.broadcast %17 : vector<8x1xf32> to vector<8x256xf32>
      %19 = arith.mulf %14, %18 : vector<8x256xf32>
      %c0_7 = arith.constant 0 : index
      %c0_8 = arith.constant 0 : index
      %c0_9 = arith.constant 0 : index
      %20 = vector.load %arg9[%c0_7, %c0_8, %c0_9] : memref<1x8x256xf32, #tpu.memory_space<vmem>>, vector<1x8x256xf32>
      %21 = vector.shape_cast %20 : vector<1x8x256xf32> to vector<8x256xf32>
      %22 = vector.shape_cast %19 : vector<8x256xf32> to vector<1x8x256xf32>
      tpu.vector_store %arg9[%c0_7, %c0_8, %c0_9], %22 {strides = array<i32>} : memref<1x8x256xf32, #tpu.memory_space<vmem>>, vector<1x8x256xf32>,
    } else {
    }
    return
  }
  func.func @transform_0(%arg0: i32, %arg1: i32, %arg2: i32) -> (i32, i32, i32) {
    %c1_i32 = arith.constant 1 : i32
    %0 = arith.subi %c1_i32, %arg1 : i32
    %1 = arith.muli %arg2, %0 : i32
    %c0_i32 = arith.constant 0 : i32
    %2 = arith.muli %c0_i32, %arg1 : i32
    %3 = arith.addi %1, %2 : i32
    %c0_i32_0 = arith.constant 0 : i32
    %c0_i32_1 = arith.constant 0 : i32
    return %arg0, %c0_i32_0, %3 : i32, i32, i32
  }
  func.func @transform_1(%arg0: i32, %arg1: i32, %arg2: i32) -> (i32, i32, i32) {
    %c1_i32 = arith.constant 1 : i32
    %0 = arith.subi %c1_i32, %arg1 : i32
    %1 = arith.muli %arg2, %0 : i32
    %c0_i32 = arith.constant 0 : i32
    %2 = arith.muli %c0_i32, %arg1 : i32
    %3 = arith.addi %1, %2 : i32
    %c0_i32_0 = arith.constant 0 : i32
    %c0_i32_1 = arith.constant 0 : i32
    return %arg0, %c0_i32_0, %3 : i32, i32, i32
  }
  func.func @transform_2(%arg0: i32, %arg1: i32, %arg2: i32) -> (i32, i32) {
    %c0_i32 = arith.constant 0 : i32
    %c0_i32_0 = arith.constant 0 : i32
    %c0_i32_1 = arith.constant 0 : i32
    return %c0_i32, %c0_i32_0 : i32, i32
  }
  func.func @transform_3(%arg0: i32, %arg1: i32, %arg2: i32) -> (i32, i32) {
    %c0_i32 = arith.constant 0 : i32
    %c0_i32_0 = arith.constant 0 : i32
    %c0_i32_1 = arith.constant 0 : i32
    return %c0_i32, %c0_i32_0 : i32, i32
  }
  func.func @transform_4(%arg0: i32, %arg1: i32, %arg2: i32) -> (i32, i32) {
    %c0_i32 = arith.constant 0 : i32
    %c0_i32_0 = arith.constant 0 : i32
    %c0_i32_1 = arith.constant 0 : i32
    return %c0_i32, %c0_i32_0 : i32, i32
  }
  func.func @transform_5(%arg0: i32, %arg1: i32, %arg2: i32) -> (i32, i32) {
    %c0_i32 = arith.constant 0 : i32
    %c0_i32_0 = arith.constant 0 : i32
    %c0_i32_1 = arith.constant 0 : i32
    return %c0_i32, %c0_i32_0 : i32, i32
  }
  func.func @transform_6(%arg0: i32, %arg1: i32, %arg2: i32) -> (i32, i32, i32) {
    %0 = arith.muli %arg2, %arg1 : i32
    %c0_i32 = arith.constant 0 : i32
    %c0_i32_0 = arith.constant 0 : i32
    return %arg0, %c0_i32, %0 : i32, i32, i32
  }
}

</mosaic_0001>

<bundles_post_ra>
// kernel: tpu_custom_call.1
= control target key start
LH: loop header
LB: loop body
LE: loop exit
PB: predicated region body
PF: predicated region fallthrough
CT: control target
= control target key end

     0   :  { %11 = vsyncpa [#allocation7], 0  ;;  %s1168_s0 = inlined_call_operand.vmem [shape: f32[2,4,256], index: 0, kind: input, shape index: {}]   ;;  %s1169_s1 = inlined_call_operand.vmem [shape: f32[2,4,256], index: 1, kind: input, shape index: {}]   ;;  %s1170_s2 = inlined_call_operand.hbm [shape: f32[8,8], index: 2, kind: input, shape index: {}]   ;;  %s1171_s3 = inlined_call_operand.vmem [shape: f32[8,1], index: 3, kind: input, shape index: {}]   ;;  %s1172_s4 = inlined_call_operand.vmem [shape: f32[8,2], index: 4, kind: input, shape index: {}]   ;;  %s1173_s5 = inlined_call_operand.vmem [shape: f32[8,2], index: 5, kind: input, shape index: {}]   ;;  %s1174_s6 = inlined_call_operand.hbm [shape: f32[2,8,256], index: 6, kind: output, shape index: {}]  }
   0x1   :  { %12 = vsyncpa [#allocation8], 0 }
   0x2   :  { %14 = vsyncpa [#allocation8 + $0x1], 0  ;;  %s975_s21 = smov 0   ;;  %s977_s22 = smov 0  }
   0x3   :  { %s979_s23 = smov 0   ;;  %s981_s24 = smov 0  }
   0x4   :  { %s983_s25 = smov 0   ;;  %s985_s26 = smov 0  }
   0x5   :  { %s987_s27 = smov 0   ;;  %s989_s28 = smov 0  }
   0x6 LB: > { %s685_s29 = sadd.s32 4294967295, %s932_s28   ;;  %s686_s30 = sadd.s32 4294967294, %s932_s28   ;;  %s932_s28 = sphi %s989_s28, %s20_s28   ;;  %s928_s27 = sphi %s987_s27, %s1197_s27   ;;  %s924_s26 = sphi %s985_s26, %s1196_s26   ;;  %s920_s25 = sphi %s983_s25, %s1195_s25   ;;  %s916_s24 = sphi %s981_s24, %s1194_s24   ;;  %s912_s23 = sphi %s979_s23, %s1193_s23   ;;  %s908_s22 = sphi %s977_s22, %s1192_s22   ;;  %s904_s21 = sphi %s975_s21, %s1191_s21  }
   0x7   : > { %s35_s7 = sadd.s32 1, %s924_s26  ;;  %s39_s8 = sadd.s32 1, %s928_s27 }
   0x8   : > { %p37_p0 = scmp.ge.s32.totalorder %s35_s7, 2  ;;  %s198_s9 = sadd.s32 1, %s912_s23 }
   0x9   : > { %p208_p1 = scmp.ne.s32.totalorder %s912_s23, %s908_s22  ;;  %p209_p2 = scmp.eq.s32.totalorder %s685_s29, 3 }
   0xa   : > { %s1199_s7 = smov (%p37_p0, %s35_s7), 0  ;;  %s1201_s8 = smov (!%p37_p0, %s39_s8), %s928_s27 }
   0xb   : > { %p1025_p3 = por %p209_p2, %p208_p1  ;;  %p214_p4 = scmp.ne.s32.totalorder %s908_s22, %s904_s21 }
   0xc   : > { %p41_p5 = scmp.ge.s32.totalorder %s1201_s8, 2  ;;  %p215_p6 = scmp.eq.s32.totalorder %s686_s30, 3 }
   0xd   : > { %s1180_s10 = scalar_select %p1025_p3, 1, 0 }
   0xe   : > { %p687_p7 = scmp.ge.s32.totalorder %s932_s28, 1  ;;  %p222_p8 = scmp.lt.s32.totalorder %s932_s28, 5 }
   0xf   : > { %s1203_s8 = smov (%p41_p5, %s1201_s8), 0  ;;  %p1035_p9 = por %p215_p6, %p214_p4 }
  0x10   : > { %1181 = sst [smem:[#allocation12_spill]] %s1203_s8  ;;  %p1039_p10 = pnand %p687_p7, %p222_p8 }
  0x11   : > { %s1182_s11 = scalar_select %p1035_p9, 1, 0 }
  0x12   : > { %s1183_s12 = scalar_select %p1039_p10, 1, 0 }
  0x13   : > { %s193_s13 = ssub.s32 %s928_s27, %s1203_s8  ;;  %p717_p12 = pneg %p1039_p10 }
  0x14   : > { %p196_p11 = scmp.eq.s32.totalorder %s193_s13, 0  ;;  %p1047_p13 = scmp.eq.s32.totalorder %s685_s29, 0 }
  0x15   : > { %s934_s16 = smov [#allocation6]   ;;  %s806_s30 = scalar_lea.hbm %s1170_s2, 128 }
  0x16   : > { %s1184_s14 = scalar_select %p1047_p13, 1, 0 }
  0x17   : > { %s1052_s15 = scalar_select %p196_p11, %s912_s23, %s198_s9  }
  0x18   : > { %s235_s17 = sshll.u32 %s934_s16, 4  ;;  %p1056_p0 = pnand %p1047_p13, %p717_p12  ;;  %s236_s17 = int_to_ptr.vmem [resolvable:$true] %s235_s17 }
  0x19   : > { %p807_p1 = scmp.ne.s32.totalorder %s1170_s2, %s806_s30  ;;  %p813_p6 = scmp.lt.u32.totalorder %s806_s30, %s1170_s2 }
  0x1a   : > { %p808_p2 = pneg %p1056_p0 }
  0x1c   : > { %p809_p4 = pnand %p808_p2, %p807_p1 }
  0x1e   : > { %p810_p5 = pneg %p809_p4 }
  0x20   : > { %p815_p7 = pnand %p813_p6, %p810_p5 }
  0x22   : > { %818 = shalt.err (!%p815_p7)
}
  0x23   : > { %s819_s8 = scalar_lea.vmem %s236_s17, 128  ;;  %p827_p9 = scmp.lt.s32.totalorder %s236_s17, %s236_s17 }
  0x24   : > { %p820_p8 = scmp.ne.s32.totalorder %s236_s17, %s819_s8  ;;  %p828_p3 = scmp.lt.s32.totalorder %s819_s8, %s819_s8 }
  0x26   : > { %p822_p11 = pnand %p820_p8, %p808_p2  ;;  %p829_p13 = por %p828_p3, %p827_p9 }
  0x28   : > { %p823_p12 = pneg %p822_p11 }
  0x2a   : > { %p830_p10 = pnand %p829_p13, %p823_p12 }
  0x2c   : > { %833 = shalt.err (!%p830_p10)
}
  0x2d   : > { %720 = dma.hbm_to_vmem [thread:$0]  (!%p1056_p0), %s1170_s2, 128, %s236_s17, [#allocation7]  }
  0x2e   : > { %p1186_p1 = scmp.ne.s32.totalorder %s1183_s12, 0 }
  0x2f   : > { %p1187_p4 = scmp.ne.s32.totalorder (!%p1186_p1), %s1184_s14, 0 }
  0x30   : > { %291 = sbr.rel (%p1186_p1) target bundleno = 932 (0x3a4), region = 44 }
  0x37   : > { %895 = dma.done.wait (%p1187_p4), [#allocation7], 128  }
  0x38   : > { %897 = vsyncadd (%p1187_p4), [#allocation7], 4294967168  ;;  %s335_s8 = sand.u32 1, %s908_s22   ;;  %p341_p3 = scmp.lt.s32.totalorder %s920_s25, 1 }
  0x39   : > { %s692_s18 = sshll.u32 %s335_s8, 4  ;;  %p697_p9 = scmp.ne.s32.totalorder %s916_s24, 0 }
  0x3a   : > { %s342_s30 = scalar_select %p341_p3, %s920_s25, 1 }
  0x3b   : > { %s1093_s14 = scalar_lea.vmem [#allocation9], %s692_s18  ;;  %372 = sbr.rel (%p697_p9) target bundleno = 439 (0x1b7), region = 52  ;;  %vm377_vm0 = vcmask (!%p697_p9), 7168   ;;  %v935_v4 = vmov (!%p697_p9), 0.0   ;;  %v394_v5 = vld [vmem:[%s1171_s3] sm:$0xff] (!%p697_p9)  ;;  %v936_v6 = vmov (!%p697_p9), 0  }
  0x3c   : > { %s707_s29 = sshll.u32 %s342_s30, 3  ;;  %378 = vst.msk [vmem:[#allocation4] sm:$0xff] (!%p697_p9), %vm377_vm0, %v935_v4  ;;  %468 = vmatprep.mubr.f32.mxu0 (!%p697_p9), %v935_v4  ;;  %797 = vset.pattern.permute.xlu0 (!%p697_p9), %v936_v6  ;;  %v391_v9 = vld [vmem:[#allocation6] sm:$0xff] (!%p697_p9)  ;;  %vm400_vm1 = vcmask (!%p697_p9), 64512  }
  0x3d   : > { %s348_s12 = scalar_lea.vmem %s1168_s0, %s707_s29  ;;  %s362_s19 = scalar_lea.vmem %s1169_s1, %s707_s29  ;;  %397 = vperm.xlu0 (!%p697_p9), %797, %v394_v5  }
  0x3e   : > { %v379_v0 = vld [vmem:[%s348_s12] sm:$0xff] (!%p697_p9) }
  0x3f   : > { %v385_v1 = vld [vmem:[%s362_s19] sm:$0xff] (!%p697_p9)  ;;  %v381_v2 = vcombine.high (!%p697_p9), %v379_v0, %v379_v0  ;;  %383 = vst [vmem:[#allocation2] sm:$0xf] (!%p697_p9), %v379_v0 }
  0x40   : > { %390 = vst [vmem:[#allocation2 + $0x8] sm:$0xf0] (!%p697_p9), %v385_v1  ;;  %v387_v3 = vcombine.low (!%p697_p9), %v385_v1, %v385_v1 }
  0x41   : > { %384 = vst [vmem:[#allocation2 + $0x8] sm:$0xf] (!%p697_p9), %v381_v2 }
  0x42   : > { %389 = vst [vmem:[#allocation2] sm:$0xf0] %v387_v3 }
  0x43   : > { %v483_v18 = vld [vmem:[#allocation4] sm:$0xff] }
  0x48   : > { %v393_v7 = vld [vmem:[#allocation2 + $0x8] sm:$0xff] }
  0x49   : > { %v392_v8 = vld [vmem:[#allocation2] sm:$0xff]  ;;  %404 = vmatprep.subr.mxu0 %v393_v7 }
  0x4a   : > { %405 = vmatpush1.msra.mxu0 %v392_v8 }
  0x4b   : > { %698 = vmatmul.mubr.msk.f32.vlgmr.msra.gmra.mrb[0].mxu0 %vm400_vm1, %v391_v9 }
  0xbc   : > { %v398_v10 = vpop.permute.xlu0 %397 }
 0x11e   : > { %v470_v11 = vpop.f32.mrb[0].mxu0 }
 0x11f   : > { %v471_v12 = vadd.f32 %v470_v11, %v398_v10  ;;  %v472_v13 = vpop.f32.mrb[1].mxu0 }
 0x120   : > { %v473_v14 = vadd.f32 %v472_v13, %v398_v10 }
 0x121   : > { %v475_v15 = vmax.f32 %v471_v12, 0.0 }
 0x122   : > { %v476_v16 = vmax.f32 %v473_v14, 0.0 }
 0x123   : > { %481 = vst [vmem:[#allocation3] sm:$0xff] %v475_v15 }
 0x124   : > { %482 = vst [vmem:[#allocation3 + $0x8] sm:$0xff] %v476_v16  ;;  %v484_v17 = vadd.f32 %v476_v16, %v475_v15 }
 0x126   : > { %485 = vadd.xlane.f32.xlu0 %v484_v17 }
 0x1b3   : > { %v486_v19 = vpop.xlane.xlu0 %485 }
 0x1b4   : > { %v487_v20 = vadd.f32 %v486_v19, %v483_v18 }
 0x1b6   : > { %489 = vst.msk [vmem:[#allocation4] sm:$0xff] %vm377_vm0, %v487_v20 }
 0x1b7 PF: > { %p490_p10 = scmp.eq.s32.totalorder %s916_s24, 1 }
 0x1b8   : > { %v497_v21 = vld [vmem:[%s1171_s3] sm:$0xff] (%p490_p10)  ;;  %v937_v22 = vmov (%p490_p10), 0   ;;  %vm509_vm2 = vcmask (%p490_p10), 15360   ;;  %vm529_vm3 = vcmask (%p490_p10), 7168  }
 0x1b9   : > { %495 = sbr.rel (!%p490_p10) target bundleno = 767 (0x2ff), region = 60  ;;  %800 = vset.pattern.permute.xlu0 (%p490_p10), %v937_v22  ;;  %v498_v23 = vmax.f32 (%p490_p10), %v497_v21, 0.0  ;;  %v502_v28 = vld [vmem:[%s1172_s4] sm:$0xff] (%p490_p10) }
 0x1ba   : > { %v518_v38 = vld [vmem:[%s1173_s5] sm:$0xff] (%p490_p10) }
 0x1bb   : > { %v499_v25 = vmul.f32 (%p490_p10), 0.0, %v498_v23 }
 0x1bd   : > { %v496_v24 = vld [vmem:[#allocation4] sm:$0xff] (%p490_p10) }
 0x1be   : > { %v500_v26 = vsub.f32 (%p490_p10), %v496_v24, %v499_v25 }
 0x1c0   : > { %v501_v27 = vmul.f32 0.00390625, %v500_v26 }
 0x1c2   : > { %505 = vperm.xlu0 %800, %v501_v27  }
 0x241   : > { %v506_v29 = vpop.permute.xlu0 %505 }
 0x242   : > { %v508_v30 = vmul.f32 %v506_v29, %v502_v28 }
 0x244   : > { %v510_v31 = vsel %vm509_vm2, %v508_v30, 0.0 }
 0x245   : > { %v511_v32 = vrot.slane %v510_v31, 4 }
 0x247   : > { %v512_v33 = vadd.f32 %v511_v32, %v510_v31 }
 0x249   : > { %v513_v34 = vrot.slane %v512_v33, 2 }
 0x24b   : > { %v514_v35 = vadd.f32 %v513_v34, %v512_v33 }
 0x24d   : > { %v515_v36 = vrot.slane %v514_v35, 1 }
 0x24f   : > { %v516_v37 = vadd.f32 %v515_v36, %v514_v35 }
 0x251   : > { %v517_v39 = vmax.f32 %v516_v37, 0.0 }
 0x253   : > { %v519_v40 = vmul.f32 %v518_v38, %v517_v39 }
 0x255   : > { %v520_v41 = vsel %vm509_vm2, %v519_v40, 0.0 }
 0x256   : > { %521 = vadd.xlane.f32.xlu0 %v520_v41 }
 0x2e3   : > { %v522_v42 = vpop.xlane.xlu0 %521 }
 0x2e4   : > { %v700_v43 = vmul.f32 -1.442695, %v522_v42 }
 0x2e6   : > { %801 = vpow2.f32 %v700_v43 }
 0x2f0   : > { %v802_v44 = vpop.eup %801 }
 0x2f1   : > { %v526_v45 = vadd.f32 1.0, %v802_v44 }
 0x2f3   : > { %803 = vrcp.f32 %v526_v45 }
 0x2fd   : > { %v804_v46 = vpop.eup %803 }
 0x2fe   : > { %530 = vst.msk [vmem:[#allocation5] sm:$0xff] %vm529_vm3, %v804_v46 }
 0x2ff PF: > { %p701_p13 = scmp.ne.s32.totalorder %s916_s24, 1 }
 0x300   : > { %v938_v48 = vmov (!%p701_p13), 0   ;;  %v538_v50 = vld [vmem:[#allocation3] sm:$0xff] (!%p701_p13)  ;;  %v539_v51 = vld [vmem:[#allocation3 + $0x8] sm:$0xff] (!%p701_p13) }
 0x301   : > { %533 = sbr.rel (%p701_p13) target bundleno = 907 (0x38b), region = 64  ;;  %805 = vset.pattern.permute.xlu0 (!%p701_p13), %v938_v48 }
 0x305   : > { %v540_v47 = vld [vmem:[#allocation5] sm:$0xff] (!%p701_p13) }
 0x306   : > { %v541_v49 = vadd.f32 (!%p701_p13), 1.0, %v540_v47 }
 0x308   : > { %544 = vperm.xlu0 %805, %v541_v49  }
 0x387   : > { %v545_v52 = vpop.permute.xlu0 %544 }
 0x388   : > { %v547_v53 = vmul.f32 %v545_v52, %v538_v50  ;;  %v548_v54 = vmul.f32 %v545_v52, %v539_v51 }
 0x38a   : > { %549 = vst [vmem:[%s1093_s14] sm:$0xff] %v547_v53  ;;  %550 = vst [vmem:[%s1093_s14 + $0x8] sm:$0xff] %v548_v54 }
 0x38b PF: > { %s710_s24 = sshll.u32 %s920_s25, 8  ;;  %s569_s30 = sshll.u32 %s1093_s14, 4  ;;  %s570_s30 = int_to_ptr.vmem [resolvable:$true] %s569_s30 }
 0x38c   : > { %s1118_s20 = scalar_lea.hbm %s1174_s6, %s710_s24  ;;  %s552_s18 = scalar_lea.sflag [#allocation8], %s335_s8 }
 0x38d   : > { %s834_s29 = scalar_lea.vmem %s570_s30, 256  ;;  %p1188_p2 = scmp.ne.s32.totalorder %s1180_s10, 0 }
 0x38e   : > { %p835_p0 = scmp.ne.s32.totalorder %s570_s30, %s834_s29  ;;  %s939_s17 = smov [#allocation9]  }
 0x38f   : > { %s838_s13 = sshll.u32 %s939_s17, 4  ;;  %s839_s13 = int_to_ptr.vmem [resolvable:$false] %s838_s13 }
 0x390   : > { %p836_p5 = pnand %p835_p0, %p1188_p2  ;;  %s840_s12 = scalar_lea.vmem %s839_s13, 512 }
 0x391   : > { %p841_p7 = scmp.lt.s32.totalorder %s570_s30, %s839_s13  ;;  %p842_p8 = scmp.lt.s32.totalorder %s840_s12, %s834_s29 }
 0x392   : > { %p837_p6 = pneg %p836_p5 }
 0x393   : > { %p843_p11 = por %p842_p8, %p841_p7 }
 0x395   : > { %p844_p12 = pnand %p843_p11, %p837_p6 }
 0x397   : > { %847 = shalt.err (!%p844_p12)
}
 0x398   : > { %s848_s25 = scalar_lea.hbm %s1118_s20, 256  ;;  %s852_s9 = scalar_lea.hbm %s1174_s6, 512 }
 0x399   : > { %p849_p1 = scmp.ne.s32.totalorder %s1118_s20, %s848_s25  ;;  %p853_p9 = scmp.lt.u32.totalorder %s1118_s20, %s1174_s6 }
 0x39a   : > { %p854_p10 = scmp.lt.u32.totalorder %s852_s9, %s848_s25  ;;  %p856_p0 = scmp.lt.u32.totalorder %s848_s25, %s1118_s20 }
 0x39b   : > { %p850_p4 = pnand %p849_p1, %p1188_p2 }
 0x39c   : > { %p855_p13 = por %p854_p10, %p853_p9 }
 0x39d   : > { %p851_p3 = pneg %p850_p4 }
 0x39e   : > { %p857_p5 = por %p856_p0, %p855_p13 }
 0x3a0   : > { %p858_p6 = pnand %p857_p5, %p851_p3 }
 0x3a2   : > { %861 = shalt.err (!%p858_p6)
}
 0x3a3   : > { %715 = dma.vmem_to_hbm [thread:$0]  (%p1188_p2), %s570_s30, 256, %s1118_s20, %s552_s18  }
 0x3a4 PF: > { %p727_p7 = scmp.ge.s32.totalorder %s932_s28, 2  ;;  %s581_s19 = sand.u32 1, %s904_s21  }
 0x3a5   : > { %p1189_p8 = scmp.ne.s32.totalorder %s1182_s11, 0  ;;  %s582_s29 = scalar_lea.sflag [#allocation8], %s581_s19 }
 0x3a7   : > { %p722_p11 = pnand %p727_p7, %p1189_p8 }
 0x3a9   : > { %899 = dma.done.wait (!%p722_p11), %s582_s29, 256  }
 0x3aa   : > { %901 = vsyncadd (!%p722_p11), %s582_s29, 4294967040  ;;  %s20_s28 = sadd.s32 1, %s932_s28   ;;  %s1190_s10 = sld [smem:[#allocation12_spill]] }
 0x3ab   : > { %p17_p12 = scmp.ge.s32.totalorder %s20_s28, 6   ;;  %s1191_s21 = smov %s908_s22 }
 0x3ac   : > { %s1192_s22 = smov %s912_s23  ;;  %s1193_s23 = smov %s1052_s15 }
 0x3ad   : > { %s1194_s24 = smov %s924_s26  ;;  %s1195_s25 = smov %s928_s27 }
 0x3ae   : > { %s1196_s26 = smov %s1199_s7  ;;  %19 = sbr.rel (!%p17_p12) target bundleno = 6 (0x6), region = 105 }
 0x3b0   : > { %s1197_s27 = smov %s1190_s10 }
 0x3b5   :  { %587 = vsyncpa [#allocation7], 1 }
 0x3b6   :  { %589 = vsyncpa [#allocation7 + $0x1], 1 }
 0x3b7   :  { %590 = vsyncpa [#allocation8], 1 }
 0x3b8   :  { %592 = vsyncpa [#allocation8 + $0x1], 1 }

</bundles_post_ra>
